<compile_context>
chip_gen: v6e
topology: v6e:2x2x1
jax: 0.10.0
libtpu: 0.0.40
codegen_flags: <defaults>
</compile_context>

<pallas_src>
import jax
import jax.numpy as jnp
from jax.experimental import pallas as pl
from jax.experimental.pallas import tpu as pltpu


def _round_up(x, m):
    return ((x + m - 1) // m) * m


def _ea_kernel(x_ref, w1_ref, b1_ref, w2_ref, b2_ref, mean_ref, experts_ref):
    """One batch tile of the fused multi-expert backbone forward.

    x_ref:       (TB, D)          bf16 input tile
    w1_ref:      (D, HID)         bf16 shared feature-extractor weight (resident)
    b1_ref:      (1, HID)         f32 shared bias
    w2_ref:      (HID, E*NC_PAD)  bf16 fused expert weights (expert-major lanes)
    b2_ref:      (1, E*NC_PAD)    f32 fused expert biases
    mean_ref:    (TB, NC_PAD)     f32 mean-of-experts logits (lane padded)
    experts_ref: (TB, E*NC_PAD)   f32 per-expert logits (lane padded)
    """
    # Shared feature extractor: bf16 MXU matmul, f32 accumulation + f32 VPU math.
    feat = jnp.dot(x_ref[...], w1_ref[...], preferred_element_type=jnp.float32)
    feat = jnp.maximum(feat + b1_ref[...], 0.0)

    # All experts in a single lane-dense MXU matmul: (TB,HID) @ (HID,E*NC_PAD).
    logits = jnp.dot(feat.astype(jnp.bfloat16), w2_ref[...],
                     preferred_element_type=jnp.float32)
    logits = logits + b2_ref[...]
    experts_ref[...] = logits.astype(experts_ref.dtype)  # one wide unmasked store

    # Mean over experts via static, lane-aligned slices (no reshape/transpose).
    nc_pad = mean_ref.shape[-1]
    num_experts = experts_ref.shape[-1] // nc_pad
    acc = logits[:, 0:nc_pad]
    for e in range(1, num_experts):
        acc = acc + logits[:, e * nc_pad:(e + 1) * nc_pad]
    mean_ref[...] = (acc * (1.0 / num_experts)).astype(mean_ref.dtype)


def ea_model_forward(x_nchw, params, mode=None, target=None):
    """EAModel.forward: returns the backbone's tuple output.

    `target` only gates loss-side logic in the original training code (the
    backbone forward itself is target-independent); `mode` must be None,
    matching the PyTorch assert.
    """
    assert mode is None
    del target

    w1, b1, w2, b2 = params
    b = x_nchw.shape[0]
    d = x_nchw.shape[1] * x_nchw.shape[2] * x_nchw.shape[3]
    num_experts, hid, num_classes = w2.shape

    # ---------- wrapper-side layout plumbing (one-time, outside kernel) ------
    nc_pad = _round_up(num_classes, 128)          # lane-dense output columns
    if b <= 256:
        tb = _round_up(max(b, 1), 8)              # single sublane-aligned tile
    else:
        tb = 256
    b_pad = _round_up(b, tb)

    x_flat = x_nchw.reshape(b, d).astype(jnp.bfloat16)   # bf16 halves input DMA
    if b_pad != b:
        x_flat = jnp.pad(x_flat, ((0, b_pad - b), (0, 0)))

    # (E, HID, NC) -> (HID, E*NC_PAD): each expert occupies a contiguous,
    # zero-padded NC_PAD lane block so one matmul serves all experts.
    w2_p = jnp.pad(w2.astype(jnp.bfloat16),
                   ((0, 0), (0, 0), (0, nc_pad - num_classes)))
    w2_flat = jnp.transpose(w2_p, (1, 0, 2)).reshape(hid, num_experts * nc_pad)
    b2_p = jnp.pad(b2.astype(jnp.float32).reshape(num_experts, num_classes),
                   ((0, 0), (0, nc_pad - num_classes)))
    b2_flat = b2_p.reshape(1, num_experts * nc_pad)

    w1_bf = w1.astype(jnp.bfloat16)
    b1_f = b1.astype(jnp.float32).reshape(1, hid)

    grid = (b_pad // tb,)

    flops = 2 * b_pad * d * hid + 2 * b_pad * hid * num_experts * nc_pad
    bytes_accessed = (x_flat.size * 2 + w1_bf.size * 2 + w2_flat.size * 2
                      + b1_f.size * 4 + b2_flat.size * 4
                      + b_pad * nc_pad * 4 + b_pad * num_experts * nc_pad * 4)

    # VMEM budget: double-buffered x/out tiles + resident weights + margin.
    vmem_bytes = (2 * tb * d * 2                                   # x tiles
                  + d * hid * 2 + hid * num_experts * nc_pad * 2   # weights
                  + 2 * (tb * nc_pad + tb * num_experts * nc_pad) * 4
                  + (1 << 20))
    cp_kwargs = dict(dimension_semantics=("parallel",))
    if vmem_bytes > (32 << 20):
        # TODO(synk): if resident weights alone exceed the v7x 64 MiB budget,
        # add a K(=D) reduction grid axis with a pl.when-managed accumulator.
        cp_kwargs["vmem_limit_bytes"] = int(min(vmem_bytes, 100 << 20))

    mean_pad, experts_pad = pl.pallas_call(
        _ea_kernel,
        out_shape=(
            jax.ShapeDtypeStruct((b_pad, nc_pad), jnp.float32),
            jax.ShapeDtypeStruct((b_pad, num_experts * nc_pad), jnp.float32),
        ),
        grid=grid,
        in_specs=[
            pl.BlockSpec((tb, d), lambda i: (i, 0)),                      # x
            pl.BlockSpec((d, hid), lambda i: (0, 0)),                     # w1
            pl.BlockSpec((1, hid), lambda i: (0, 0)),                     # b1
            pl.BlockSpec((hid, num_experts * nc_pad), lambda i: (0, 0)),  # w2
            pl.BlockSpec((1, num_experts * nc_pad), lambda i: (0, 0)),    # b2
        ],
        out_specs=(
            pl.BlockSpec((tb, nc_pad), lambda i: (i, 0)),
            pl.BlockSpec((tb, num_experts * nc_pad), lambda i: (i, 0)),
        ),
        compiler_params=pltpu.CompilerParams(**cp_kwargs),
        cost_estimate=pl.CostEstimate(flops=flops, transcendentals=0,
                                      bytes_accessed=bytes_accessed),
    )(x_flat, w1_bf, b1_f, w2_flat, b2_flat)

    # ---------- un-pad / reshape to the original (tuple) contract ------------
    mean_logits = mean_pad[:b, :num_classes]
    experts = experts_pad[:b].reshape(b, num_experts, nc_pad)[:, :, :num_classes]
    experts = jnp.transpose(experts, (1, 0, 2))          # (E, B, NC)

    out = (mean_logits, experts)
    assert isinstance(out, tuple)                        # mirrors PyTorch assert
    return out


def init_params(key, in_dim, hidden, num_classes, num_experts):
    k1, k2 = jax.random.split(key)
    w1 = (jax.random.normal(k1, (in_dim, hidden), jnp.float32)
          * 0.02).astype(jnp.bfloat16)
    b1 = jnp.zeros((1, hidden), jnp.float32)
    w2 = (jax.random.normal(k2, (num_experts, hidden, num_classes), jnp.float32)
          * 0.02).astype(jnp.bfloat16)
    b2 = jnp.zeros((num_experts, 1, num_classes), jnp.float32)
    return (w1, b1, w2, b2)


def _reference_forward(x_nchw, params):
    """Pure-JAX reference (same bf16-in / f32-accumulate numerics)."""
    w1, b1, w2, b2 = params
    b = x_nchw.shape[0]
    x = x_nchw.reshape(b, -1).astype(jnp.bfloat16)
    feat = jnp.dot(x, w1.astype(jnp.bfloat16),
                   preferred_element_type=jnp.float32)
    feat = jnp.maximum(feat + b1.astype(jnp.float32), 0.0)
    experts = jnp.einsum("bh,ehc->ebc", feat.astype(jnp.bfloat16),
                         w2.astype(jnp.bfloat16),
                         preferred_element_type=jnp.float32)
    experts = experts + b2.astype(jnp.float32)
    return experts.mean(axis=0), experts


if __name__ == "__main__":
    # Small shapes consistent with an NCHW image backbone.
    B, C, H, W = 2, 4, 16, 16
    HIDDEN = 32
    NUM_CLASSES = 10
    NUM_EXPERTS = 3

    key = jax.random.PRNGKey(0)
    kx, kp = jax.random.split(key)
    x = jax.random.normal(kx, (B, C, H, W), jnp.float32)
    target = jnp.zeros((B,), jnp.int32)  # EAModel.requires_target = True
    params = init_params(kp, C * H * W, HIDDEN, NUM_CLASSES, NUM_EXPERTS)

    mean_logits, expert_logits = ea_model_forward(x, params, mode=None,
                                                  target=target)
    jax.block_until_ready(mean_logits)
    jax.block_until_ready(expert_logits)

    ref_mean, ref_experts = _reference_forward(x, params)
    assert mean_logits.shape == (B, NUM_CLASSES)
    assert expert_logits.shape == (NUM_EXPERTS, B, NUM_CLASSES)
    assert jnp.allclose(mean_logits, ref_mean, atol=1e-2, rtol=1e-2)
    assert jnp.allclose(expert_logits, ref_experts, atol=1e-2, rtol=1e-2)

    # TODO(synk): the real backbone_class (e.g. a multi-expert ResNet) is not
    # specified in the module; a deterministic multi-expert MLP stands in, and
    # _hook_before_iter (a training-mode hook) has no inference equivalent.
    print("KERNEL_OK")
</pallas_src>

<mosaic_0001>
module attributes {stable_mosaic.version = 11 : i64} {
  func.func @_ea_kernel(%arg0: i32, %arg1: memref<8x1024xbf16, #tpu.memory_space<vmem>>, %arg2: memref<1024x32xbf16, #tpu.memory_space<vmem>>, %arg3: memref<1x32xf32, #tpu.memory_space<vmem>>, %arg4: memref<32x384xbf16, #tpu.memory_space<vmem>>, %arg5: memref<1x384xf32, #tpu.memory_space<vmem>>, %arg6: memref<8x128xf32, #tpu.memory_space<vmem>>, %arg7: memref<8x384xf32, #tpu.memory_space<vmem>>) attributes {dimension_semantics = [#tpu.dimension_semantics<parallel>], iteration_bounds = array<i64: 1>, scalar_prefetch = 0 : i64, scratch_operands = 0 : i64, tpu.core_type = #tpu.core_type<tc>, window_params = [{transform_indices = @transform_0, window_bounds = array<i64: 8, 1024>}, {pipeline_mode = #tpu.pipeline_mode<synchronous>, transform_indices = @transform_1, window_bounds = array<i64: 1024, 32>}, {pipeline_mode = #tpu.pipeline_mode<synchronous>, transform_indices = @transform_2, window_bounds = array<i64: 1, 32>}, {pipeline_mode = #tpu.pipeline_mode<synchronous>, transform_indices = @transform_3, window_bounds = array<i64: 32, 384>}, {pipeline_mode = #tpu.pipeline_mode<synchronous>, transform_indices = @transform_4, window_bounds = array<i64: 1, 384>}, {transform_indices = @transform_5, window_bounds = array<i64: 8, 128>}, {transform_indices = @transform_6, window_bounds = array<i64: 8, 384>}]} {
    %c0 = arith.constant 0 : index
    %c0_0 = arith.constant 0 : index
    %0 = vector.load %arg1[%c0, %c0_0] : memref<8x1024xbf16, #tpu.memory_space<vmem>>, vector<8x1024xbf16>
    %c0_1 = arith.constant 0 : index
    %c0_2 = arith.constant 0 : index
    %1 = vector.load %arg2[%c0_1, %c0_2] : memref<1024x32xbf16, #tpu.memory_space<vmem>>, vector<1024x32xbf16>
    %cst = arith.constant dense<0.000000e+00> : vector<8x32xf32>
    %2 = tpu.matmul %0, %1, %cst {dimension_numbers = #tpu.dot_dimension_numbers<[1], [0], [0], [1], [0, 0, 1, 1], [], []>} : vector<8x1024xbf16>, vector<1024x32xbf16>, vector<8x32xf32> -> vector<8x32xf32>
    %c0_3 = arith.constant 0 : index
    %c0_4 = arith.constant 0 : index
    %3 = vector.load %arg3[%c0_3, %c0_4] : memref<1x32xf32, #tpu.memory_space<vmem>>, vector<1x32xf32>
    %4 = vector.broadcast %3 : vector<1x32xf32> to vector<8x32xf32>
    %5 = arith.addf %2, %4 : vector<8x32xf32>
    %cst_5 = arith.constant 0.000000e+00 : f32
    %6 = vector.broadcast %cst_5 : f32 to vector<8x32xf32>
    %7 = arith.maximumf %5, %6 : vector<8x32xf32>
    %8 = arith.truncf %7 : vector<8x32xf32> to vector<8x32xbf16>
    %c0_6 = arith.constant 0 : index
    %c0_7 = arith.constant 0 : index
    %9 = vector.load %arg4[%c0_6, %c0_7] : memref<32x384xbf16, #tpu.memory_space<vmem>>, vector<32x384xbf16>
    %cst_8 = arith.constant dense<0.000000e+00> : vector<8x384xf32>
    %10 = tpu.matmul %8, %9, %cst_8 {dimension_numbers = #tpu.dot_dimension_numbers<[1], [0], [0], [1], [0, 0, 1, 1], [], []>} : vector<8x32xbf16>, vector<32x384xbf16>, vector<8x384xf32> -> vector<8x384xf32>
    %c0_9 = arith.constant 0 : index
    %c0_10 = arith.constant 0 : index
    %11 = vector.load %arg5[%c0_9, %c0_10] : memref<1x384xf32, #tpu.memory_space<vmem>>, vector<1x384xf32>
    %12 = vector.broadcast %11 : vector<1x384xf32> to vector<8x384xf32>
    %13 = arith.addf %10, %12 : vector<8x384xf32>
    %c0_11 = arith.constant 0 : index
    %c0_12 = arith.constant 0 : index
    %14 = vector.load %arg7[%c0_11, %c0_12] : memref<8x384xf32, #tpu.memory_space<vmem>>, vector<8x384xf32>
    tpu.vector_store %arg7[%c0_11, %c0_12], %13 {strides = array<i32>} : memref<8x384xf32, #tpu.memory_space<vmem>>, vector<8x384xf32>,
    %15 = vector.extract_strided_slice %13 {offsets = [0, 0], sizes = [8, 128], strides = [1, 1]} : vector<8x384xf32> to vector<8x128xf32>
    %16 = vector.extract_strided_slice %13 {offsets = [0, 128], sizes = [8, 128], strides = [1, 1]} : vector<8x384xf32> to vector<8x128xf32>
    %17 = arith.addf %15, %16 : vector<8x128xf32>
    %18 = vector.extract_strided_slice %13 {offsets = [0, 256], sizes = [8, 128], strides = [1, 1]} : vector<8x384xf32> to vector<8x128xf32>
    %19 = arith.addf %17, %18 : vector<8x128xf32>
    %cst_13 = arith.constant 0.333333343 : f32
    %20 = vector.broadcast %cst_13 : f32 to vector<8x128xf32>
    %21 = arith.mulf %19, %20 : vector<8x128xf32>
    %c0_14 = arith.constant 0 : index
    %c0_15 = arith.constant 0 : index
    %22 = vector.load %arg6[%c0_14, %c0_15] : memref<8x128xf32, #tpu.memory_space<vmem>>, vector<8x128xf32>
    tpu.vector_store %arg6[%c0_14, %c0_15], %21 {strides = array<i32>} : memref<8x128xf32, #tpu.memory_space<vmem>>, vector<8x128xf32>,
    return
  }
  func.func @transform_0(%arg0: i32) -> (i32, i32) {
    %c0_i32 = arith.constant 0 : i32
    %c0_i32_0 = arith.constant 0 : i32
    return %arg0, %c0_i32 : i32, i32
  }
  func.func @transform_1(%arg0: i32) -> (i32, i32) {
    %c0_i32 = arith.constant 0 : i32
    %c0_i32_0 = arith.constant 0 : i32
    %c0_i32_1 = arith.constant 0 : i32
    return %c0_i32, %c0_i32_0 : i32, i32
  }
  func.func @transform_2(%arg0: i32) -> (i32, i32) {
    %c0_i32 = arith.constant 0 : i32
    %c0_i32_0 = arith.constant 0 : i32
    %c0_i32_1 = arith.constant 0 : i32
    return %c0_i32, %c0_i32_0 : i32, i32
  }
  func.func @transform_3(%arg0: i32) -> (i32, i32) {
    %c0_i32 = arith.constant 0 : i32
    %c0_i32_0 = arith.constant 0 : i32
    %c0_i32_1 = arith.constant 0 : i32
    return %c0_i32, %c0_i32_0 : i32, i32
  }
  func.func @transform_4(%arg0: i32) -> (i32, i32) {
    %c0_i32 = arith.constant 0 : i32
    %c0_i32_0 = arith.constant 0 : i32
    %c0_i32_1 = arith.constant 0 : i32
    return %c0_i32, %c0_i32_0 : i32, i32
  }
  func.func @transform_5(%arg0: i32) -> (i32, i32) {
    %c0_i32 = arith.constant 0 : i32
    %c0_i32_0 = arith.constant 0 : i32
    return %arg0, %c0_i32 : i32, i32
  }
  func.func @transform_6(%arg0: i32) -> (i32, i32) {
    %c0_i32 = arith.constant 0 : i32
    %c0_i32_0 = arith.constant 0 : i32
    return %arg0, %c0_i32 : i32, i32
  }
}

</mosaic_0001>

<bundles_post_ra>
// kernel: tpu_custom_call.1
= control target key start
LH: loop header
LB: loop body
LE: loop exit
PB: predicated region body
PF: predicated region fallthrough
CT: control target
= control target key end

     0   :  { %12 = vsyncpa [#allocation3], 0  ;;  %s1498_s0 = inlined_call_operand.vmem [shape: bf16[8,1024], index: 0, kind: input, shape index: {}]   ;;  %s1499_s1 = inlined_call_operand.vmem [shape: bf16[1024,32], index: 1, kind: input, shape index: {}]   ;;  %s1500_s2 = inlined_call_operand.vmem [shape: f32[1,32], index: 2, kind: input, shape index: {}]   ;;  %s1501_s3 = inlined_call_operand.vmem [shape: bf16[32,384], index: 3, kind: input, shape index: {}]   ;;  %s1502_s4 = inlined_call_operand.vmem [shape: f32[1,384], index: 4, kind: input, shape index: {}]   ;;  %s1503_s5 = inlined_call_operand.hbm [shape: f32[8,128], index: 5, kind: output, shape index: {0}]   ;;  %s1504_s6 = inlined_call_operand.hbm [shape: f32[8,384], index: 6, kind: output, shape index: {1}]  }
   0x1   :  { %v1100_v0 = vld [vmem:[%s1499_s1 + $0x78] sm:$0xff]   ;;  %v1104_v4 = vld [vmem:[%s1499_s1 + $0x70] sm:$0xff]   ;;  %v1108_v8 = vld [vmem:[%s1499_s1 + $0x68] sm:$0xff]  }
   0x2   :  { %v1101_v1 = vld [vmem:[%s1499_s1 + $0xf8] sm:$0xff]   ;;  %996 = vmatprep.subr.bf16.mxu0 %v1100_v0  ;;  %v1105_v5 = vld [vmem:[%s1499_s1 + $0xf0] sm:$0xff]   ;;  %v1109_v9 = vld [vmem:[%s1499_s1 + $0xe8] sm:$0xff]  }
   0x3   :  { %v1102_v2 = vld [vmem:[%s1499_s1 + $0x38] sm:$0xff]   ;;  %1018 = vmatprep.subr.bf16.mxu1 %v1101_v1  ;;  %v1106_v6 = vld [vmem:[%s1499_s1 + $0x30] sm:$0xff]   ;;  %v1110_v10 = vld [vmem:[%s1499_s1 + $0x28] sm:$0xff]  }
   0x4   :  { %v1103_v3 = vld [vmem:[%s1499_s1 + $0xb8] sm:$0xff]   ;;  %997 = vmatpush3.bf16.msra.mxu0 %v1102_v2  ;;  %v1107_v7 = vld [vmem:[%s1499_s1 + $0xb0] sm:$0xff]   ;;  %v1111_v11 = vld [vmem:[%s1499_s1 + $0xa8] sm:$0xff]  }
   0x5   :  { %1019 = vmatpush3.bf16.msra.mxu1 %v1103_v3  ;;  %998 = vmatprep.subr.bf16.mxu0 %v1104_v4  ;;  %v1112_v12 = vld [vmem:[%s1499_s1 + $0x60] sm:$0xff]   ;;  %v1116_v16 = vld [vmem:[%s1499_s1 + $0x58] sm:$0xff]   ;;  %v1120_v20 = vld [vmem:[%s1499_s1 + $0x50] sm:$0xff]  }
   0x6   :  { %1020 = vmatprep.subr.bf16.mxu1 %v1105_v5  ;;  %v1113_v13 = vld [vmem:[%s1499_s1 + $0xe0] sm:$0xff]   ;;  %v1117_v17 = vld [vmem:[%s1499_s1 + $0xd8] sm:$0xff]   ;;  %v1121_v21 = vld [vmem:[%s1499_s1 + $0xd0] sm:$0xff]  }
   0x7   :  { %v1114_v14 = vld [vmem:[%s1499_s1 + $0x20] sm:$0xff]   ;;  %v1118_v18 = vld [vmem:[%s1499_s1 + $0x18] sm:$0xff]   ;;  %v1122_v22 = vld [vmem:[%s1499_s1 + $0x10] sm:$0xff]  }
   0x8   :  { %999 = vmatpush3.bf16.msra.mxu0 %v1106_v6  ;;  %v1115_v15 = vld [vmem:[%s1499_s1 + $0xa0] sm:$0xff]   ;;  %v1119_v19 = vld [vmem:[%s1499_s1 + $0x98] sm:$0xff]   ;;  %v1123_v23 = vld [vmem:[%s1499_s1 + $0x90] sm:$0xff]  }
   0x9   :  { %1021 = vmatpush3.bf16.msra.mxu1 %v1107_v7  ;;  %1000 = vmatprep.subr.bf16.mxu0 %v1108_v8  ;;  %v1124_v24 = vld [vmem:[%s1499_s1 + $0x48] sm:$0xff]   ;;  %v1128_v28 = vld [vmem:[%s1499_s1 + $0x40] sm:$0xff]   ;;  %v1136_v38 = vld [vmem:[%s1499_s1 + $0x178] sm:$0xff]  }
   0xa   :  { %1022 = vmatprep.subr.bf16.mxu1 %v1109_v9  ;;  %v1125_v25 = vld [vmem:[%s1499_s1 + $0xc8] sm:$0xff]   ;;  %v1129_v29 = vld [vmem:[%s1499_s1 + $0xc0] sm:$0xff]   ;;  %v1137_v39 = vld [vmem:[%s1499_s1 + $0x1f8] sm:$0xff]  }
   0xb   :  { %v1126_v26 = vld [vmem:[%s1499_s1 + $0x8] sm:$0xff]   ;;  %v1130_v30 = vld [vmem:[%s1499_s1] sm:$0xff]   ;;  %v1138_v40 = vld [vmem:[%s1499_s1 + $0x138] sm:$0xff]  }
   0xc   :  { %1001 = vmatpush3.bf16.msra.mxu0 %v1110_v10  ;;  %v1127_v27 = vld [vmem:[%s1499_s1 + $0x88] sm:$0xff]   ;;  %v1131_v31 = vld [vmem:[%s1499_s1 + $0x80] sm:$0xff]   ;;  %v1139_v41 = vld [vmem:[%s1499_s1 + $0x1b8] sm:$0xff]  }
   0xd   :  { %1023 = vmatpush3.bf16.msra.mxu1 %v1111_v11  ;;  %1002 = vmatprep.subr.bf16.mxu0 %v1112_v12  ;;  %v25_v32 = vld [vmem:[%s1498_s0] sm:$0xff]  ;;  %v26_v33 = vld [vmem:[%s1498_s0 + $0x8] sm:$0xff]  ;;  %v1140_v42 = vld [vmem:[%s1499_s1 + $0x170] sm:$0xff]  }
   0xe   :  { %1024 = vmatprep.subr.bf16.mxu1 %v1113_v13  ;;  %v916_v34 = vcombine.low %v25_v32, %v25_v32  ;;  %v917_v35 = vcombine.high %v25_v32, %v25_v32  ;;  %v918_v36 = vcombine.low %v26_v33, %v26_v33  ;;  %v919_v37 = vcombine.high %v26_v33, %v26_v33  ;;  %v1141_v43 = vld [vmem:[%s1499_s1 + $0x1f0] sm:$0xff]   ;;  %v1144_v46 = vld [vmem:[%s1499_s1 + $0x168] sm:$0xff]   ;;  %v1148_v50 = vld [vmem:[%s1499_s1 + $0x160] sm:$0xff]  }
   0xf   :  { %v1142_v44 = vld [vmem:[%s1499_s1 + $0x130] sm:$0xff]   ;;  %v1145_v47 = vld [vmem:[%s1499_s1 + $0x1e8] sm:$0xff]   ;;  %v1149_v51 = vld [vmem:[%s1499_s1 + $0x1e0] sm:$0xff]  }
  0x10   :  { %1003 = vmatpush3.bf16.msra.mxu0 %v1114_v14  ;;  %608 = vmatprep.mubr.bf16.mxu0 %v917_v35  ;;  %v1143_v45 = vld [vmem:[%s1499_s1 + $0x1b0] sm:$0xff]   ;;  %v1146_v48 = vld [vmem:[%s1499_s1 + $0x128] sm:$0xff]   ;;  %v1150_v52 = vld [vmem:[%s1499_s1 + $0x120] sm:$0xff]  }
  0x11   :  { %1025 = vmatpush3.bf16.msra.mxu1 %v1115_v15  ;;  %1004 = vmatprep.subr.bf16.mxu0 %v1116_v16  ;;  %v1147_v49 = vld [vmem:[%s1499_s1 + $0x1a8] sm:$0xff]   ;;  %v1151_v53 = vld [vmem:[%s1499_s1 + $0x1a0] sm:$0xff]   ;;  %v1152_v54 = vld [vmem:[%s1499_s1 + $0x158] sm:$0xff]  }
  0x12   :  { %1026 = vmatprep.subr.bf16.mxu1 %v1117_v17  ;;  %648 = vmatprep.mubr.bf16.mxu1 %v919_v37  ;;  %v1153_v55 = vld [vmem:[%s1499_s1 + $0x1d8] sm:$0xff]   ;;  %v1156_v58 = vld [vmem:[%s1499_s1 + $0x150] sm:$0xff]   ;;  %v1160_v62 = vld [vmem:[%s1499_s1 + $0x148] sm:$0xff]  }
  0x13   :  { %v1154_v56 = vld [vmem:[%s1499_s1 + $0x118] sm:$0xff]   ;;  %v1157_v59 = vld [vmem:[%s1499_s1 + $0x1d0] sm:$0xff]   ;;  %v1161_v63 = vld [vmem:[%s1499_s1 + $0x1c8] sm:$0xff]  }
  0x14   :  { %1005 = vmatpush3.bf16.msra.mxu0 %v1118_v18  ;;  %v1155_v57 = vld [vmem:[%s1499_s1 + $0x198] sm:$0xff]   ;;  %v1158_v60 = vld [vmem:[%s1499_s1 + $0x110] sm:$0xff]   ;;  %v1162_v0 = vld [vmem:[%s1499_s1 + $0x108] sm:$0xff]  }
  0x15   :  { %1027 = vmatpush3.bf16.msra.mxu1 %v1119_v19  ;;  %1006 = vmatprep.subr.bf16.mxu0 %v1120_v20  ;;  %v1159_v61 = vld [vmem:[%s1499_s1 + $0x190] sm:$0xff]   ;;  %v1163_v1 = vld [vmem:[%s1499_s1 + $0x188] sm:$0xff]   ;;  %v1164_v2 = vld [vmem:[%s1499_s1 + $0x140] sm:$0xff]  }
  0x16   :  { %1028 = vmatprep.subr.bf16.mxu1 %v1121_v21  ;;  %v1165_v3 = vld [vmem:[%s1499_s1 + $0x1c0] sm:$0xff]   ;;  %v27_v6 = vld [vmem:[%s1498_s0 + $0x10] sm:$0xff]  ;;  %v28_v9 = vld [vmem:[%s1498_s0 + $0x18] sm:$0xff] }
  0x17   :  { %v1166_v4 = vld [vmem:[%s1499_s1 + $0x100] sm:$0xff]   ;;  %v920_v7 = vcombine.low %v27_v6, %v27_v6  ;;  %v921_v8 = vcombine.high %v27_v6, %v27_v6  ;;  %v922_v10 = vcombine.low %v28_v9, %v28_v9  ;;  %v923_v11 = vcombine.high %v28_v9, %v28_v9 }
  0x18   :  { %1007 = vmatpush3.bf16.msra.mxu0 %v1122_v22  ;;  %v1167_v5 = vld [vmem:[%s1499_s1 + $0x180] sm:$0xff]  }
  0x19   :  { %1029 = vmatpush3.bf16.msra.mxu1 %v1123_v23  ;;  %1008 = vmatprep.subr.bf16.mxu0 %v1124_v24 }
  0x1a   :  { %1030 = vmatprep.subr.bf16.mxu1 %v1125_v25 }
  0x1c   :  { %1009 = vmatpush3.bf16.msra.mxu0 %v1126_v26 }
  0x1d   :  { %1031 = vmatpush3.bf16.msra.mxu1 %v1127_v27  ;;  %1010 = vmatprep.subr.bf16.mxu0 %v1128_v28 }
  0x1e   :  { %1032 = vmatprep.subr.bf16.mxu1 %v1129_v29 }
  0x20   :  { %1011 = vmatpush3.bf16.msra.mxu0 %v1130_v30 }
  0x21   :  { %1033 = vmatpush3.bf16.msra.mxu1 %v1131_v31  ;;  %1040 = vmatprep.subr.bf16.mxu0 %v1136_v38 }
  0x22   :  { %1062 = vmatprep.subr.bf16.mxu1 %v1137_v39 }
  0x23   :  { %609 = vmatmul.mubr.bf16.vlgmr.msra.gmra.mxu0 %v916_v34 }
  0x24   :  { %649 = vmatmul.mubr.bf16.vlgmr.msra.gmra.mxu1 %v918_v36  ;;  %1041 = vmatpush3.bf16.msra.mxu0 %v1138_v40 }
  0x25   :  { %1063 = vmatpush3.bf16.msra.mxu1 %v1139_v41  ;;  %1042 = vmatprep.subr.bf16.mxu0 %v1140_v42 }
  0x26   :  { %1064 = vmatprep.subr.bf16.mxu1 %v1141_v43  ;;  %688 = vmatprep.mubr.bf16.mxu0 %v921_v8 }
  0x27   :  { %728 = vmatprep.mubr.bf16.mxu1 %v923_v11 }
  0x28   :  { %1043 = vmatpush3.bf16.msra.mxu0 %v1142_v44 }
  0x29   :  { %1065 = vmatpush3.bf16.msra.mxu1 %v1143_v45  ;;  %1044 = vmatprep.subr.bf16.mxu0 %v1144_v46 }
  0x2a   :  { %1066 = vmatprep.subr.bf16.mxu1 %v1145_v47 }
  0x2c   :  { %1045 = vmatpush3.bf16.msra.mxu0 %v1146_v48 }
  0x2d   :  { %1067 = vmatpush3.bf16.msra.mxu1 %v1147_v49  ;;  %1046 = vmatprep.subr.bf16.mxu0 %v1148_v50 }
  0x2e   :  { %1068 = vmatprep.subr.bf16.mxu1 %v1149_v51 }
  0x30   :  { %1047 = vmatpush3.bf16.msra.mxu0 %v1150_v52 }
  0x31   :  { %1069 = vmatpush3.bf16.msra.mxu1 %v1151_v53  ;;  %1048 = vmatprep.subr.bf16.mxu0 %v1152_v54 }
  0x32   :  { %1070 = vmatprep.subr.bf16.mxu1 %v1153_v55 }
  0x34   :  { %1049 = vmatpush3.bf16.msra.mxu0 %v1154_v56 }
  0x35   :  { %1071 = vmatpush3.bf16.msra.mxu1 %v1155_v57  ;;  %1050 = vmatprep.subr.bf16.mxu0 %v1156_v58 }
  0x36   :  { %1072 = vmatprep.subr.bf16.mxu1 %v1157_v59 }
  0x38   :  { %1051 = vmatpush3.bf16.msra.mxu0 %v1158_v60 }
  0x39   :  { %1073 = vmatpush3.bf16.msra.mxu1 %v1159_v61  ;;  %1052 = vmatprep.subr.bf16.mxu0 %v1160_v62 }
  0x3a   :  { %1074 = vmatprep.subr.bf16.mxu1 %v1161_v63 }
  0x3c   :  { %1053 = vmatpush3.bf16.msra.mxu0 %v1162_v0 }
  0x3d   :  { %1075 = vmatpush3.bf16.msra.mxu1 %v1163_v1  ;;  %1054 = vmatprep.subr.bf16.mxu0 %v1164_v2 }
  0x3e   :  { %1076 = vmatprep.subr.bf16.mxu1 %v1165_v3 }
  0x40   :  { %1055 = vmatpush3.bf16.msra.mxu0 %v1166_v4 }
  0x41   :  { %1077 = vmatpush3.bf16.msra.mxu1 %v1167_v5 }
  0x42   :  { %13 = vsyncpa [#allocation5], 0  ;;  %v1174_v12 = vld [vmem:[%s1501_s3 + $0x1c] ss:$12 sps:$4 sm:$0xff]   ;;  %v1172_v13 = vld [vmem:[%s1501_s3 + $0x18] ss:$12 sps:$4 sm:$0xff]   ;;  %v748_v47 = vlaneseq }
  0x43   :  { %689 = vmatmul.mubr.bf16.vlgmr.msra.gmra.mxu0 %v920_v7  ;;  %v1175_v14 = vld [vmem:[%s1501_s3 + $0x20] ss:$12 sps:$4 sm:$0xff]   ;;  %811 = vmatprep.subr.bf16.mxu0 %v1174_v12  ;;  %v1224_v15 = vmov 0.0   ;;  %v1178_v16 = vld [vmem:[%s1501_s3 + $0x4] ss:$12 sps:$4 sm:$0xff]   ;;  %v1225_v19 = vmov 0  }
  0x44   :  { %729 = vmatmul.mubr.bf16.vlgmr.msra.gmra.mxu1 %v922_v10  ;;  %1087 = vmatprep.subr.bf16.mxu1 %v1224_v15  ;;  %v1176_v17 = vld [vmem:[%s1501_s3] ss:$12 sps:$4 sm:$0xff]   ;;  %v1179_v18 = vld [vmem:[%s1501_s3 + $0x8] ss:$12 sps:$4 sm:$0xff]   ;;  %vm1226_vm0 = vmmov 0   ;;  %vm795_vm1 = vcmask 261120  }
  0x45   :  { %812 = vmatpush1.bf16.msra.mxu0 %v1172_v13  ;;  %1088 = vmatpush3.bf16.msra.mxu1 %v1175_v14  ;;  %v915_v29 = vld [vmem:[%s1500_s2] ss:$0 sm:$0xff]  ;;  %v749_v48 = vshrl.u32 %v748_v47, 7  ;;  %s1227_s25 = smov [#allocation4]  }
  0x46   :  { %1089 = vmatprep.subr.bf16.mxu1 %v1224_v15  ;;  %813 = vmatprep.subr.bf16.mxu0 %v1178_v16  ;;  %v746_v51 = vld [vmem:[%s1502_s4] sm:$0x7]  ;;  %s903_s26 = sshll.u32 %s1227_s25, 4  ;;  %s1228_s4 = smov [#allocation2]   ;;  %s904_s26 = int_to_ptr.vmem [resolvable:$true] %s903_s26 }
  0x47   :  { %831 = vmatprep.mubr.bf16.mxu0 %v1225_v19  ;;  %1091 = vmatprep.mubr.msk.bf16.mxu1 %vm1226_vm0, %v1224_v15  ;;  %v750_v49 = vsub.s32 0, %v749_v48  ;;  %v758_v50 = vsub.s32 2, %v749_v48  ;;  %v754_v52 = vsub.s32 1, %v749_v48  ;;  %s893_s27 = sshll.u32 %s1228_s4, 4  ;;  %s1180_s28 = scalar_lea.vmem %s904_s26, 384  ;;  %s894_s27 = int_to_ptr.vmem [resolvable:$true] %s893_s27 }
  0x48   :  { %p1181_p0 = scmp.ne.s32.totalorder %s904_s26, %s1180_s28  ;;  %p1185_p1 = scmp.lt.s32.totalorder %s904_s26, %s904_s26 }
  0x49   :  { %814 = vmatpush1.bf16.msra.mxu0 %v1176_v17  ;;  %1090 = vmatpush3.bf16.msra.mxu1 %v1179_v18  ;;  %v751_v53 = vrot.slane %v746_v51, %v750_v49  ;;  %v759_v54 = vrot.slane %v746_v51, %v758_v50  ;;  %v755_v55 = vrot.slane %v746_v51, %v754_v52  ;;  %p1186_p2 = scmp.lt.s32.totalorder %s1180_s28, %s1180_s28 }
  0x4b   :  { %p1187_p3 = por %p1186_p2, %p1185_p1 }
  0x4d   :  { %p1188_p4 = pnand %p1187_p3, %p1181_p0 }
  0xe3   :  { %v1012_v20 = vpop.f32.mrf.mxu0 }
  0xe4   :  { %v1034_v21 = vpop.f32.mrf.mxu1 }
  0xe5   :  { %v1013_v22 = vpop.f32.mrf.mxu0 }
  0xe6   :  { %v1035_v23 = vpop.f32.mrf.mxu1  ;;  %v1014_v28 = vadd.f32 %v1013_v22, %v1012_v20 }
  0xe7   :  { %v1015_v24 = vpop.f32.mrf.mxu0  ;;  %v1036_v31 = vadd.f32 %v1035_v23, %v1034_v21 }
  0xe8   :  { %v1037_v25 = vpop.f32.mrf.mxu1  ;;  %v611_v30 = vadd.f32 %v1014_v28, %v915_v29 }
  0xe9   :  { %v1016_v26 = vpop.f32.mrf.mxu0 }
  0xea   :  { %v1038_v27 = vpop.f32.mrf.mxu1  ;;  %v651_v36 = vadd.f32 %v1036_v31, %v611_v30 }
 0x103   :  { %v1056_v32 = vpop.f32.mrf.mxu0 }
 0x104   :  { %v1078_v33 = vpop.f32.mrf.mxu1 }
 0x105   :  { %v1057_v34 = vpop.f32.mrf.mxu0 }
 0x106   :  { %v1079_v35 = vpop.f32.mrf.mxu1  ;;  %v1058_v37 = vadd.f32 %v1057_v34, %v1056_v32 }
 0x107   :  { %v1059_v38 = vpop.f32.mrf.mxu0  ;;  %v1080_v41 = vadd.f32 %v1079_v35, %v1078_v33 }
 0x108   :  { %v1081_v39 = vpop.f32.mrf.mxu1  ;;  %v691_v40 = vadd.f32 %v1058_v37, %v651_v36 }
 0x109   :  { %v1060_v42 = vpop.f32.mrf.mxu0 }
 0x10a   :  { %v1082_v43 = vpop.f32.mrf.mxu1  ;;  %v731_v44 = vadd.f32 %v1080_v41, %v691_v40 }
 0x10c   :  { %v736_v45 = vmax.f32 %v731_v44, 0.0 }
 0x10e   :  { %v737_v46 = vpack.c.bf16 %v736_v45, %v736_v45 }
 0x110   :  { %994 = vmatmul.mubr.msk.bf16.vlgmr.msra.gmra.mxu0 %vm795_vm1, %v737_v46  ;;  %1092 = vmatmul.mubr.msk.bf16.vlgmr.msra.gmra.mxu1 %vm795_vm1, %v737_v46 }
 0x1d0   :  { %v833_v56 = vpop.f32.mrf.mxu0  ;;  %v874_v57 = vpop.f32.mrf.mxu1 }
 0x1d1   :  { %v834_v58 = vadd.f32 %v833_v56, %v751_v53  ;;  %v875_v59 = vadd.f32 %v874_v57, %v759_v54 }
 0x1d2   :  { %v835_v60 = vpop.f32.mrf.mxu0  ;;  %v1093_v61 = vpop.f32.mrf.mxu1 }
 0x1d3   :  { %880 = vst [vmem:[#allocation4] sm:$0xff] %v834_v58  ;;  %882 = vst [vmem:[#allocation4 + $0x10] sm:$0xff] %v875_v59  ;;  %v836_v62 = vadd.f32 %v835_v60, %v755_v55 }
 0x1d4   :  { %v837_v63 = vpop.f32.mrf.mxu0  ;;  %v877_v0 = vpop.f32.mrf.mxu1 }
 0x1d5   :  { %881 = vst [vmem:[#allocation4 + $0x8] sm:$0xff] %v836_v62  ;;  %v883_v1 = vadd.f32 %v836_v62, %v834_v58 }
 0x1d6   :  { %v838_v2 = vpop.f32.mrf.mxu0  ;;  %v1094_v3 = vpop.f32.mrf.mxu1 }
 0x1d7   :  { %1191 = shalt.err (!%p1188_p4)
}
 0x1d8   :  { %906 = dma.vmem_to_hbm [thread:$0]  %s904_s26, 384, %s1504_s6, [#allocation5]   ;;  %v884_v4 = vadd.f32 %v883_v1, %v875_v59 }
 0x1d9   :  { %s1200_s7 = scalar_lea.vmem %s894_s27, 128  ;;  %p1205_p6 = scmp.lt.s32.totalorder %s894_s27, %s894_s27 }
 0x1da   :  { %v885_v5 = vmul.f32 0.33333334, %v884_v4  ;;  %p1201_p5 = scmp.ne.s32.totalorder %s894_s27, %s1200_s7  ;;  %p1206_p7 = scmp.lt.s32.totalorder %s1200_s7, %s1200_s7 }
 0x1dc   :  { %886 = vst [vmem:[#allocation2] sm:$0xff] %v885_v5  ;;  %p1207_p8 = por %p1206_p7, %p1205_p6 }
 0x1de   :  { %p1208_p9 = pnand %p1207_p8, %p1201_p5 }
 0x1e0   :  { %1211 = shalt.err (!%p1208_p9)
}
 0x1e1   :  { %896 = dma.vmem_to_hbm [thread:$0]  %s894_s27, 128, %s1503_s5, [#allocation3]  }
 0x1e2   :  { %1220 = dma.done.wait [#allocation3], 128  }
 0x1e3   :  { %1221 = vsyncadd [#allocation3], 4294967168 }
 0x1e4   :  { %1222 = dma.done.wait [#allocation5], 384  }
 0x1e5   :  { %1223 = vsyncadd [#allocation5], 4294966912 }
 0x1e6   :  { %913 = vsyncpa [#allocation3], 1 }
 0x1e7   :  { %914 = vsyncpa [#allocation5], 1 }

</bundles_post_ra>
